<compile_context>
chip_gen: v6e
topology: v6e:2x2x1
jax: 0.10.0
libtpu: 0.0.40
codegen_flags: <defaults>
</compile_context>

<pallas_src>
import math

import jax
import jax.numpy as jnp
from jax.experimental import pallas as pl
from jax.experimental.pallas import tpu as pltpu


def _round_down(v: int, m: int) -> int:
    return (v // m) * m


def _chip_config():
    """(per-block byte budget, scoped-VMEM cap) per TPU generation."""
    kind = jax.devices()[0].device_kind.lower()
    if "v7" in kind:
        # 64 MiB physical VMEM per TC: ~4 MiB blocks, 6 live blocks ~24 MiB.
        return 4 * 1024 * 1024, 32 * 1024 * 1024
    # v6e / v5e (128 MiB physical VMEM): 8 MiB blocks are cheap (~48 MiB live).
    return 8 * 1024 * 1024, 64 * 1024 * 1024


def _build_pe(seq_len: int, d_model: int, dtype=jnp.float32) -> jnp.ndarray:
    """Deterministic sinusoidal table, identical math to the torch __init__.
    Built directly in the activation dtype so no cast pass is needed per call."""
    assert d_model % 2 == 0, "d_model must be even (as in the torch module)"
    position = jnp.arange(seq_len, dtype=jnp.float32)[:, None]            # (S, 1)
    div_term = jnp.exp(
        jnp.arange(0, d_model, 2, dtype=jnp.float32)
        * (-math.log(10000.0) / d_model)
    )                                                                      # (D/2,)
    angles = position * div_term                                           # (S, D/2)
    pe = jnp.zeros((seq_len, d_model), dtype=jnp.float32)
    pe = pe.at[:, 0::2].set(jnp.sin(angles))
    pe = pe.at[:, 1::2].set(jnp.cos(angles))
    return pe[None, :, :].astype(dtype)                                    # (1, S, D)


def _pe_add_kernel(x_ref, pe_ref, o_ref):
    # Elementwise add; pe block has leading dim 1 and broadcasts over the
    # (possibly folded) batch dim of the x block — free VPU work in an HBM-bound kernel.
    o_ref[...] = x_ref[...] + pe_ref[...]


def _launch(x_in, pe_in, bb, tt, lanes, vmem_cap):
    B, T, _ = x_in.shape
    n_t = pl.cdiv(T, tt)
    n_b = pl.cdiv(B, bb)          # bb always divides B (chosen as a divisor)
    itemsize = jnp.dtype(x_in.dtype).itemsize

    # 2 double-buffered copies of (x block + out block + pe block).
    footprint = 2 * (2 * bb + 1) * tt * lanes * itemsize
    vmem_limit = int(min(vmem_cap, max(8 * 1024 * 1024, 2 * footprint)))

    return pl.pallas_call(
        _pe_add_kernel,
        out_shape=jax.ShapeDtypeStruct((B, T, lanes), x_in.dtype),
        grid_spec=pltpu.PrefetchScalarGridSpec(
            num_scalar_prefetch=0,
            # Batch innermost: pe block index is constant across consecutive
            # steps -> its DMA is skipped, only x/out tiles stream.
            grid=(n_t, n_b),
            in_specs=[pl.BlockSpec((bb, tt, lanes), lambda t, b: (b, t, 0)),
                      pl.BlockSpec((1, tt, lanes), lambda t, b: (0, t, 0))],
            out_specs=pl.BlockSpec((bb, tt, lanes), lambda t, b: (b, t, 0)),
        ),
        compiler_params=pltpu.CompilerParams(
            dimension_semantics=("parallel", "parallel"),
            vmem_limit_bytes=vmem_limit,
        ),
    )(x_in, pe_in)


@jax.jit
def positional_encoding(x: jnp.ndarray, pe: jnp.ndarray) -> jnp.ndarray:
    """x: (B, S, D); pe: (1, S_pe, D), S_pe >= S, same dtype as x.
    Returns dropout(x + pe[:, :S, :]) in eval mode (dropout == identity)."""
    B, S, D = x.shape
    S_pe = pe.shape[1]
    assert pe.shape[0] == 1 and pe.shape[2] == D and S_pe >= S
    assert pe.dtype == x.dtype, "build the pe table in the activation dtype at init"

    itemsize = jnp.dtype(x.dtype).itemsize
    sub = max(8, 32 // itemsize)       # native sublane multiple: 8 f32 / 16 bf16 / 32 int8
    tile_bytes, vmem_cap = _chip_config()

    if D % 128 == 0:
        # Already lane-dense: tile the sequence axis; pe passed UNSLICED (blocks are
        # multiples of 8 rows, so they are legal for both arrays; partial tiles are
        # masked on store and x/pe rows stay aligned at t*ts).
        x_in = x
        lanes = D
        if S >= 8:
            step = sub if S >= sub else 8
            rows_budget = max(step, tile_bytes // (D * itemsize))
            ts = max(step, _round_down(min(S, rows_budget), step))
            pe_in = pe
        else:
            ts = S                       # full-extent seq block
            pe_in = pe if S_pe == S else jax.lax.slice_in_dim(pe, 0, S, axis=1)
    elif (S * D) % 128 == 0:
        # Repack (S, D) -> (R, 128): vregs filled densely instead of 1 sublane out of 8.
        pe_s = pe if S_pe == S else jax.lax.slice_in_dim(pe, 0, S, axis=1)
        R = (S * D) // 128
        x_in = x.reshape(B, R, 128)
        pe_in = pe_s.reshape(1, R, 128)
        lanes = 128
        if R >= 8:
            step = sub if R >= sub else 8
            rows_budget = max(step, tile_bytes // (128 * itemsize))
            ts = max(step, _round_down(min(R, rows_budget), step))
        else:
            ts = R
    else:
        # Tiny / odd trailing size: one full-extent block per (folded) batch step.
        pe_s = pe if S_pe == S else jax.lax.slice_in_dim(pe, 0, S, axis=1)
        F = S * D
        x_in = x.reshape(B, 1, F)
        pe_in = pe_s.reshape(1, 1, F)
        ts = 1
        lanes = F

    T = x_in.shape[1]

    # v7x megacore: a single-batch call should still expose >= 2 grid steps.
    if B == 1 and pl.cdiv(T, ts) == 1 and ts > 8 and T > 8:
        ts = max(8, _round_down(ts // 2, 8))

    # Short sequences: fold a batch factor into the block ("make the tile bigger"
    # when S alone can't grow). bb is a divisor of B so no partial leading blocks.
    bb = 1
    if pl.cdiv(T, ts) == 1 and B > 1:
        blk_bytes = ts * lanes * itemsize
        cand = max(1, tile_bytes // max(1, blk_bytes))
        bb = max(d for d in range(1, B + 1) if B % d == 0 and d <= cand)

    out = _launch(x_in, pe_in, bb, ts, lanes, vmem_cap)
    return out.reshape(B, S, D)


if __name__ == "__main__":
    key = jax.random.PRNGKey(0)
    k1, k2, k3, k4 = jax.random.split(key, 4)

    # Case 1: module-scale toy shape (batch=2, seq=8, d_model=32).
    # S*D = 256 is a multiple of 128 -> exercises the dense (R, 128) repack path.
    b1, s1, d1 = 2, 8, 32
    x1 = jax.random.normal(k1, (b1, s1, d1), dtype=jnp.float32)
    pe1 = _build_pe(s1, d1, dtype=x1.dtype)
    out1 = jax.block_until_ready(positional_encoding(x1, pe1))
    ref1 = x1 + pe1[:, :s1, :]
    assert out1.shape == (b1, s1, d1)
    assert jnp.allclose(out1, ref1, atol=1e-6), "mismatch (repack path)"

    # Case 2: lane-dense d_model (multiple of 128) -> seq-tiled path, unsliced pe.
    b2, s2, d2 = 2, 16, 128
    x2 = jax.random.normal(k2, (b2, s2, d2), dtype=jnp.float32)
    pe2 = _build_pe(s2, d2, dtype=x2.dtype)
    out2 = jax.block_until_ready(positional_encoding(x2, pe2))
    ref2 = x2 + pe2[:, :s2, :]
    assert jnp.allclose(out2, ref2, atol=1e-6), "mismatch (lane-dense path)"

    # Case 3: ragged S with an oversized pe table (S_pe > S), unsliced pe + partial tiles.
    b3, s3, d3, s3_max = 2, 10, 128, 16
    x3 = jax.random.normal(k3, (b3, s3, d3), dtype=jnp.float32)
    pe3 = _build_pe(s3_max, d3, dtype=x3.dtype)
    out3 = jax.block_until_ready(positional_encoding(x3, pe3))
    ref3 = x3 + pe3[:, :s3, :]
    assert jnp.allclose(out3, ref3, atol=1e-6), "mismatch (ragged-S / unsliced pe)"

    # Case 4: bf16 activations -> exercises the 16-row sublane rounding.
    b4, s4, d4 = 2, 32, 128
    x4 = jax.random.normal(k4, (b4, s4, d4), dtype=jnp.float32).astype(jnp.bfloat16)
    pe4 = _build_pe(s4, d4, dtype=x4.dtype)
    out4 = jax.block_until_ready(positional_encoding(x4, pe4))
    ref4 = x4 + pe4[:, :s4, :]
    assert jnp.allclose(out4.astype(jnp.float32), ref4.astype(jnp.float32)), \
        "mismatch (bf16 path)"

    print("KERNEL_OK")
</pallas_src>

<mosaic_0001>
module attributes {stable_mosaic.version = 11 : i64} {
  func.func @_pe_add_kernel(%arg0: i32, %arg1: i32, %arg2: memref<2x2x128xf32, #tpu.memory_space<vmem>>, %arg3: memref<1x2x128xf32, #tpu.memory_space<vmem>>, %arg4: memref<2x2x128xf32, #tpu.memory_space<vmem>>) attributes {dimension_semantics = [#tpu.dimension_semantics<parallel>, #tpu.dimension_semantics<parallel>], iteration_bounds = array<i64: 1, 1>, scalar_prefetch = 0 : i64, scratch_operands = 0 : i64, tpu.core_type = #tpu.core_type<tc>, window_params = [{transform_indices = @transform_0, window_bounds = array<i64: 2, 2, 128>}, {transform_indices = @transform_1, window_bounds = array<i64: 1, 2, 128>}, {transform_indices = @transform_2, window_bounds = array<i64: 2, 2, 128>}]} {
    %c0 = arith.constant 0 : index
    %c0_0 = arith.constant 0 : index
    %c0_1 = arith.constant 0 : index
    %0 = vector.load %arg2[%c0, %c0_0, %c0_1] : memref<2x2x128xf32, #tpu.memory_space<vmem>>, vector<2x2x128xf32>
    %c0_2 = arith.constant 0 : index
    %c0_3 = arith.constant 0 : index
    %c0_4 = arith.constant 0 : index
    %1 = vector.load %arg3[%c0_2, %c0_3, %c0_4] : memref<1x2x128xf32, #tpu.memory_space<vmem>>, vector<1x2x128xf32>
    %2 = vector.broadcast %1 : vector<1x2x128xf32> to vector<2x2x128xf32>
    %3 = arith.addf %0, %2 : vector<2x2x128xf32>
    %c0_5 = arith.constant 0 : index
    %c0_6 = arith.constant 0 : index
    %c0_7 = arith.constant 0 : index
    %4 = vector.load %arg4[%c0_5, %c0_6, %c0_7] : memref<2x2x128xf32, #tpu.memory_space<vmem>>, vector<2x2x128xf32>
    tpu.vector_store %arg4[%c0_5, %c0_6, %c0_7], %3 {strides = array<i32>} : memref<2x2x128xf32, #tpu.memory_space<vmem>>, vector<2x2x128xf32>,
    return
  }
  func.func @transform_0(%arg0: i32, %arg1: i32) -> (i32, i32, i32) {
    %c0_i32 = arith.constant 0 : i32
    %c0_i32_0 = arith.constant 0 : i32
    return %arg1, %arg0, %c0_i32 : i32, i32, i32
  }
  func.func @transform_1(%arg0: i32, %arg1: i32) -> (i32, i32, i32) {
    %c0_i32 = arith.constant 0 : i32
    %c0_i32_0 = arith.constant 0 : i32
    %c0_i32_1 = arith.constant 0 : i32
    return %c0_i32, %arg0, %c0_i32_0 : i32, i32, i32
  }
  func.func @transform_2(%arg0: i32, %arg1: i32) -> (i32, i32, i32) {
    %c0_i32 = arith.constant 0 : i32
    %c0_i32_0 = arith.constant 0 : i32
    return %arg1, %arg0, %c0_i32 : i32, i32, i32
  }
}

</mosaic_0001>

<bundles_post_ra>
// kernel: positional_encoding.1
= control target key start
LH: loop header
LB: loop body
LE: loop exit
PB: predicated region body
PF: predicated region fallthrough
CT: control target
= control target key end

     0   :  { %s52_s0 = inlined_call_operand.vmem [shape: f32[2,2,128], index: 0, kind: input, shape index: {}]   ;;  %s53_s1 = inlined_call_operand.vmem [shape: f32[1,2,128], index: 1, kind: input, shape index: {}]   ;;  %s54_s2 = inlined_call_operand.vmem [shape: f32[2,2,128], index: 2, kind: output, shape index: {}]  }
   0x1   :  { %v11_v0 = vld [vmem:[%s52_s0] sm:$0x3]  ;;  %v12_v2 = vld [vmem:[%s52_s0 + $0x2] sm:$0x3] }
   0x2   :  { %v13_v1 = vld [vmem:[%s53_s1] sm:$0x3] }
   0x3   :  { %v14_v3 = vadd.f32 %v13_v1, %v11_v0  ;;  %v15_v4 = vadd.f32 %v13_v1, %v12_v2 }
   0x5   :  { %16 = vst [vmem:[%s54_s2] sm:$0x3] %v14_v3  ;;  %17 = vst [vmem:[%s54_s2 + $0x2] sm:$0x3] %v15_v4 }

</bundles_post_ra>
